<compile_context>
chip_gen: v7x
topology: tpu7x:2x2x1
jax: 0.10.0
libtpu: 0.0.40
codegen_flags: <defaults>
</compile_context>

<pallas_src>
import math

import jax
import jax.numpy as jnp
from jax.experimental import pallas as pl
from jax.experimental.pallas import tpu as pltpu


def _round_up(x, m):
    return ((x + m - 1) // m) * m


def _pick_tm(n_pad, tm_max):
    """Largest 128-multiple tile dividing n_pad, preferring >=2 (even) grid steps."""
    cands = [t for t in range(128, min(tm_max, n_pad) + 1, 128) if n_pad % t == 0]
    if not cands:
        return min(n_pad, 128)
    multi = [t for t in cands if n_pad // t >= 2]
    if multi:
        even = [t for t in multi if (n_pad // t) % 2 == 0]
        return max(even) if even else max(multi)
    return max(cands)


def patch_embed_kernel(x_ref, w_ref, b_ref, o_ref):
    # x_ref: (tm, Kp) bf16 | w_ref: (Kp, E) bf16 | b_ref: (1, E) f32 | o_ref: (tm, E)
    y = jnp.dot(x_ref[...], w_ref[...], preferred_element_type=jnp.float32)  # MXU, fp32 acc
    y = y + b_ref[...]                                                        # fp32 bias add
    o_ref[...] = y.astype(o_ref.dtype)


def _make_proj_call(n_pad, k_pad, embed_dim, tm, out_dtype, single_buffer_consts):
    const_kwargs = {}
    if single_buffer_consts:
        # Constant block index -> no need to double-buffer; saves a K*E VMEM copy.
        const_kwargs = dict(pipeline_mode=pl.Buffered(buffer_count=1))
    return pl.pallas_call(
        patch_embed_kernel,
        out_shape=jax.ShapeDtypeStruct((n_pad, embed_dim), out_dtype),
        grid_spec=pltpu.PrefetchScalarGridSpec(
            num_scalar_prefetch=0,
            grid=(n_pad // tm,),
            in_specs=[
                pl.BlockSpec((tm, k_pad), lambda i: (i, 0)),                         # token tile
                pl.BlockSpec((k_pad, embed_dim), lambda i: (0, 0), **const_kwargs),  # resident weight
                pl.BlockSpec((1, embed_dim), lambda i: (0, 0), **const_kwargs),      # fp32 bias
            ],
            out_specs=pl.BlockSpec((tm, embed_dim), lambda i: (i, 0)),               # lane-dense E
        ),
        compiler_params=pltpu.CompilerParams(
            dimension_semantics=("parallel",)),
    )


def _patch_proj_pallas(patches, w2d, b2d, *, out_dtype, tm_max=512):
    """patches: (N, K) bf16; w2d: (K, E) bf16; b2d: (1, E) f32 -> (N, E) out_dtype."""
    N, K = patches.shape
    E = w2d.shape[1]

    if N < 128:
        # MXU would see < 128 rows and fixed pallas_call overhead dominates.
        y = jnp.dot(patches, w2d, preferred_element_type=jnp.float32) + b2d
        return y.astype(out_dtype)

    # Lane-align the contraction dim (zero padding is numerically free).
    k_pad = _round_up(K, 128)
    if k_pad != K:
        patches = jnp.pad(patches, ((0, 0), (0, k_pad - K)))
        w2d = jnp.pad(w2d, ((0, k_pad - K), (0, 0)))

    # Pad tokens only to a multiple of 128 (also a multiple of 16 for bf16
    # sublane packing) — never to a full tile.
    n_pad = _round_up(N, 128)
    if n_pad != N:
        patches = jnp.pad(patches, ((0, n_pad - N), (0, 0)))

    tm = _pick_tm(n_pad, tm_max)

    try:
        out = _make_proj_call(n_pad, k_pad, E, tm, out_dtype, True)(patches, w2d, b2d)
    except Exception:
        # pl.Buffered(1) is only a VMEM saving; fall back to default buffering.
        out = _make_proj_call(n_pad, k_pad, E, tm, out_dtype, False)(patches, w2d, b2d)

    return out[:N]


def patch_embed_forward(x, weight, bias, patch_size, *,
                        compute_dtype=jnp.bfloat16, out_dtype=None, tm_max=512):
    """
    x:      [B, T, C, H, W] or [B, C, H, W]
    weight: [E, C, 1, P, P] (Conv3d weight) or [E, C, P, P]
    bias:   [E]
    returns [B, T, num_patches, E]   (matches the PyTorch forward)
    """
    if x.ndim == 4:
        x = x[:, None]  # [B, 1, C, H, W]
    B, T, C, H, W = x.shape
    P = patch_size
    if weight.ndim == 5:  # [E, C, 1, P, P] -> [E, C, P, P]
        weight = weight.reshape(weight.shape[0], weight.shape[1], P, P)
    E = weight.shape[0]
    Gh, Gw = H // P, W // P
    if out_dtype is None:
        out_dtype = x.dtype

    # Cast to the MXU-native dtype *before* the patchify transpose so the
    # materialized copy in HBM is half-width.
    xc = x.astype(compute_dtype)
    # [B,T,C,H,W] -> [B,T,C,Gh,P,Gw,P] -> [B,T,Gh,Gw,C,P,P] -> [N_tok, C*P*P]
    xp = xc.reshape(B, T, C, Gh, P, Gw, P)
    xp = xp.transpose(0, 1, 3, 5, 2, 4, 6)
    patches = xp.reshape(B * T * Gh * Gw, C * P * P)

    # weight [E, C, P, P] -> [C*P*P, E]; bias kept fp32 for the in-kernel add.
    w2d = weight.reshape(E, C * P * P).T.astype(compute_dtype)
    b2d = bias.reshape(1, E).astype(jnp.float32)

    out = _patch_proj_pallas(patches, w2d, b2d, out_dtype=out_dtype, tm_max=tm_max)
    return out.reshape(B, T, Gh * Gw, E)


if __name__ == "__main__":
    key = jax.random.PRNGKey(0)
    B, T, C, H, W = 2, 2, 3, 64, 64
    P = 8          # K = C*P*P = 192 -> padded to 256 inside the wrapper
    E = 128        # embed_dim (lane-dense output)

    kx, kw, kb = jax.random.split(key, 3)
    x = jax.random.normal(kx, (B, T, C, H, W), jnp.float32)

    # deterministic init mimicking nn.Conv3d defaults (uniform +/- 1/sqrt(fan_in))
    fan_in = C * P * P
    lim = 1.0 / math.sqrt(fan_in)
    weight = jax.random.uniform(kw, (E, C, 1, P, P), jnp.float32, -lim, lim)  # Conv3d layout
    bias = jax.random.uniform(kb, (E,), jnp.float32, -lim, lim)

    out = patch_embed_forward(x, weight, bias, P)
    jax.block_until_ready(out)

    # fp32 reference: Conv3d with kernel (1,P,P) has no temporal mixing -> per-frame
    # 2D conv, then the same flatten/permute as the PyTorch forward.
    Gh, Gw = H // P, W // P
    w4 = weight.reshape(E, C, P, P)
    x2 = x.reshape(B * T, C, H, W)
    ref = jax.lax.conv_general_dilated(
        x2, w4, window_strides=(P, P), padding="VALID",
        dimension_numbers=("NCHW", "OIHW", "NCHW"),
        precision=jax.lax.Precision.HIGHEST)                 # [B*T, E, Gh, Gw]
    ref = ref + bias.reshape(1, E, 1, 1)
    ref = ref.reshape(B, T, E, Gh * Gw).transpose(0, 1, 3, 2)  # [B, T, N, E]

    assert out.shape == (B, T, Gh * Gw, E), out.shape
    # bf16 MXU inputs (fp32 accumulation) vs fp32 reference -> loosened tolerance.
    max_err = float(jnp.max(jnp.abs(out.astype(jnp.float32) - ref)))
    assert max_err < 3e-2, f"mismatch vs conv reference: max abs err = {max_err}"

    print("KERNEL_OK")
</pallas_src>

<mosaic_0001>
module attributes {stable_mosaic.version = 11 : i64} {
  func.func @patch_embed_kernel(%arg0: i32, %arg1: memref<128x256xbf16, #tpu.memory_space<vmem>>, %arg2: memref<256x128xbf16, #tpu.memory_space<vmem>>, %arg3: memref<1x128xf32, #tpu.memory_space<vmem>>, %arg4: memref<128x128xf32, #tpu.memory_space<vmem>>) attributes {dimension_semantics = [#tpu.dimension_semantics<parallel>], iteration_bounds = array<i64: 2>, scalar_prefetch = 0 : i64, scratch_operands = 0 : i64, tpu.core_type = #tpu.core_type<tc>, window_params = [{transform_indices = @transform_0, window_bounds = array<i64: 128, 256>}, {pipeline_mode = #tpu.pipeline_mode<synchronous>, transform_indices = @transform_1, window_bounds = array<i64: 256, 128>}, {pipeline_mode = #tpu.pipeline_mode<synchronous>, transform_indices = @transform_2, window_bounds = array<i64: 1, 128>}, {transform_indices = @transform_3, window_bounds = array<i64: 128, 128>}]} {
    %c0 = arith.constant 0 : index
    %c0_0 = arith.constant 0 : index
    %0 = vector.load %arg1[%c0, %c0_0] : memref<128x256xbf16, #tpu.memory_space<vmem>>, vector<128x256xbf16>
    %c0_1 = arith.constant 0 : index
    %c0_2 = arith.constant 0 : index
    %1 = vector.load %arg2[%c0_1, %c0_2] : memref<256x128xbf16, #tpu.memory_space<vmem>>, vector<256x128xbf16>
    %cst = arith.constant dense<0.000000e+00> : vector<128x128xf32>
    %2 = tpu.matmul %0, %1, %cst {dimension_numbers = #tpu.dot_dimension_numbers<[1], [0], [0], [1], [0, 0, 1, 1], [], []>} : vector<128x256xbf16>, vector<256x128xbf16>, vector<128x128xf32> -> vector<128x128xf32>
    %c0_3 = arith.constant 0 : index
    %c0_4 = arith.constant 0 : index
    %3 = vector.load %arg3[%c0_3, %c0_4] : memref<1x128xf32, #tpu.memory_space<vmem>>, vector<1x128xf32>
    %4 = vector.broadcast %3 : vector<1x128xf32> to vector<128x128xf32>
    %5 = arith.addf %2, %4 : vector<128x128xf32>
    %c0_5 = arith.constant 0 : index
    %c0_6 = arith.constant 0 : index
    %6 = vector.load %arg4[%c0_5, %c0_6] : memref<128x128xf32, #tpu.memory_space<vmem>>, vector<128x128xf32>
    tpu.vector_store %arg4[%c0_5, %c0_6], %5 {strides = array<i32>} : memref<128x128xf32, #tpu.memory_space<vmem>>, vector<128x128xf32>,
    return
  }
  func.func @transform_0(%arg0: i32) -> (i32, i32) {
    %c0_i32 = arith.constant 0 : i32
    %c0_i32_0 = arith.constant 0 : i32
    return %arg0, %c0_i32 : i32, i32
  }
  func.func @transform_1(%arg0: i32) -> (i32, i32) {
    %c0_i32 = arith.constant 0 : i32
    %c0_i32_0 = arith.constant 0 : i32
    %c0_i32_1 = arith.constant 0 : i32
    return %c0_i32, %c0_i32_0 : i32, i32
  }
  func.func @transform_2(%arg0: i32) -> (i32, i32) {
    %c0_i32 = arith.constant 0 : i32
    %c0_i32_0 = arith.constant 0 : i32
    %c0_i32_1 = arith.constant 0 : i32
    return %c0_i32, %c0_i32_0 : i32, i32
  }
  func.func @transform_3(%arg0: i32) -> (i32, i32) {
    %c0_i32 = arith.constant 0 : i32
    %c0_i32_0 = arith.constant 0 : i32
    return %arg0, %c0_i32 : i32, i32
  }
}

module attributes {stable_mosaic.version = 11 : i64} {
  func.func @patch_embed_kernel(%arg0: i32, %arg1: memref<128x256xbf16, #tpu.memory_space<vmem>>, %arg2: memref<256x128xbf16, #tpu.memory_space<vmem>>, %arg3: memref<1x128xf32, #tpu.memory_space<vmem>>, %arg4: memref<128x128xf32, #tpu.memory_space<vmem>>) attributes {dimension_semantics = [#tpu.dimension_semantics<parallel>], iteration_bounds = array<i64: 2>, scalar_prefetch = 0 : i64, scratch_operands = 0 : i64, tpu.core_type = #tpu.core_type<tc>, window_params = [{transform_indices = @transform_0, window_bounds = array<i64: 128, 256>}, {pipeline_mode = #tpu.pipeline_mode<synchronous>, transform_indices = @transform_1, window_bounds = array<i64: 256, 128>}, {pipeline_mode = #tpu.pipeline_mode<synchronous>, transform_indices = @transform_2, window_bounds = array<i64: 1, 128>}, {transform_indices = @transform_3, window_bounds = array<i64: 128, 128>}]} {
    %c0 = arith.constant 0 : index
    %c0_0 = arith.constant 0 : index
    %0 = vector.load %arg1[%c0, %c0_0] : memref<128x256xbf16, #tpu.memory_space<vmem>>, vector<128x256xbf16>
    %c0_1 = arith.constant 0 : index
    %c0_2 = arith.constant 0 : index
    %1 = vector.load %arg2[%c0_1, %c0_2] : memref<256x128xbf16, #tpu.memory_space<vmem>>, vector<256x128xbf16>
    %cst = arith.constant dense<0.000000e+00> : vector<128x128xf32>
    %2 = tpu.matmul %0, %1, %cst {dimension_numbers = #tpu.dot_dimension_numbers<[1], [0], [0], [1], [0, 0, 1, 1], [], []>} : vector<128x256xbf16>, vector<256x128xbf16>, vector<128x128xf32> -> vector<128x128xf32>
    %c0_3 = arith.constant 0 : index
    %c0_4 = arith.constant 0 : index
    %3 = vector.load %arg3[%c0_3, %c0_4] : memref<1x128xf32, #tpu.memory_space<vmem>>, vector<1x128xf32>
    %4 = vector.broadcast %3 : vector<1x128xf32> to vector<128x128xf32>
    %5 = arith.addf %2, %4 : vector<128x128xf32>
    %c0_5 = arith.constant 0 : index
    %c0_6 = arith.constant 0 : index
    %6 = vector.load %arg4[%c0_5, %c0_6] : memref<128x128xf32, #tpu.memory_space<vmem>>, vector<128x128xf32>
    tpu.vector_store %arg4[%c0_5, %c0_6], %5 {strides = array<i32>} : memref<128x128xf32, #tpu.memory_space<vmem>>, vector<128x128xf32>,
    return
  }
  func.func @transform_0(%arg0: i32) -> (i32, i32) {
    %c0_i32 = arith.constant 0 : i32
    %c0_i32_0 = arith.constant 0 : i32
    return %arg0, %c0_i32 : i32, i32
  }
  func.func @transform_1(%arg0: i32) -> (i32, i32) {
    %c0_i32 = arith.constant 0 : i32
    %c0_i32_0 = arith.constant 0 : i32
    %c0_i32_1 = arith.constant 0 : i32
    return %c0_i32, %c0_i32_0 : i32, i32
  }
  func.func @transform_2(%arg0: i32) -> (i32, i32) {
    %c0_i32 = arith.constant 0 : i32
    %c0_i32_0 = arith.constant 0 : i32
    %c0_i32_1 = arith.constant 0 : i32
    return %c0_i32, %c0_i32_0 : i32, i32
  }
  func.func @transform_3(%arg0: i32) -> (i32, i32) {
    %c0_i32 = arith.constant 0 : i32
    %c0_i32_0 = arith.constant 0 : i32
    return %arg0, %c0_i32 : i32, i32
  }
}

</mosaic_0001>

<bundles_post_ra>
// kernel: tpu_custom_call.1
= control target key start
LH: loop header
LB: loop body
LE: loop exit
PB: predicated region body
PF: predicated region fallthrough
CT: control target
= control target key end

     0   :  { %8 = vsyncpa [#allocation3], 0  ;;  %s1307_s0 = inlined_call_operand.hbm [shape: bf16[256,256], index: 0, kind: input, shape index: {}]   ;;  %s1308_s1 = inlined_call_operand.hbm [shape: bf16[256,128], index: 1, kind: input, shape index: {}]   ;;  %s1309_s2 = inlined_call_operand.vmem [shape: f32[1,128], index: 2, kind: input, shape index: {}]   ;;  %s1310_s3 = inlined_call_operand.hbm [shape: f32[256,128], index: 3, kind: output, shape index: {}]  }
   0x1   :  { %10 = vsyncpa [#allocation3 + $0x1], 0 }
   0x2   :  { %11 = vsyncpa [#allocation6], 0 }
   0x3   :  { %12 = vsyncpa [#allocation4], 0 }
   0x4   :  { %14 = vsyncpa [#allocation4 + $0x1], 0  ;;  %s1044_s12 = smov 0   ;;  %s1046_s13 = smov 0  }
   0x5   :  { %s1048_s14 = smov 0   ;;  %s1050_s15 = smov 0  }
   0x6 LB: > { %s1065_s16 = sadd.s32 4294967295, %s1013_s15   ;;  %s649_s17 = sadd.s32 4294967294, %s1013_s15   ;;  %s1013_s15 = sphi %s1050_s15, %s1330_s15   ;;  %s1009_s14 = sphi %s1048_s14, %s1329_s14   ;;  %s1005_s13 = sphi %s1046_s13, %s1328_s13   ;;  %s1001_s12 = sphi %s1044_s12, %s1327_s12  }
   0x7   : > { %p40_p0 = scmp.ne.s32.totalorder %s1005_s13, %s1001_s12  ;;  %p1311_p1 = scmp.eq.s32.totalorder %s1065_s16, 0 }
   0x8   : > { %p112_p3 = scmp.eq.s32.totalorder %s649_s17, 1  ;;  %p650_p5 = scmp.ge.s32.totalorder %s1013_s15, 1 }
   0x9   : > { %p1074_p4 = por %p1311_p1, %p40_p0  ;;  %p119_p7 = scmp.lt.s32.totalorder %s1013_s15, 3 }
   0xa   : > { %p1079_p6 = por %p112_p3, %p40_p0  ;;  %s1015_s21 = smov [#allocation5]  }
   0xb   : > { %s1314_s18 = scalar_select %p1074_p4, 1, 0 }
   0xc   : > { %s1315_s19 = scalar_select %p1079_p6, 1, 0 }
   0xd   : > { %p1084_p8 = pnand %p650_p5, %p119_p7  ;;  %s131_s22 = sshll.u32 %s1015_s21, 4  ;;  %s1088_s22 = int_to_ptr.vmem [resolvable:$true] %s131_s22 }
   0xe   : > { %s1100_s24 = sadd.s32 1, %s1013_s15   ;;  %s27_s25 = sadd.s32 1, %s1009_s14 }
   0xf   : > { %s1316_s20 = scalar_select %p1084_p8, 1, 0 }
  0x10   : > { %p790_p9 = pneg %p1084_p8  ;;  %s24_s26 = ssub.s32 %s1013_s15, %s1100_s24 }
  0x11   : > { %s885_s29 = scalar_lea.hbm %s1308_s1, 2048 }
  0x12   : > { %p1095_p11 = pnand %p790_p9, %p1311_p1  ;;  %p886_p12 = scmp.ne.s32.totalorder %s1308_s1, %s885_s29 }
  0x13   : > { %p892_p5 = scmp.lt.u32.totalorder %s885_s29, %s1308_s1 }
  0x14   : > { %p887_p13 = pneg %p1095_p11 }
  0x16   : > { %p888_p0 = pnand %p887_p13, %p886_p12 }
  0x18   : > { %p889_p3 = pneg %p888_p0 }
  0x1a   : > { %p894_p7 = pnand %p892_p5, %p889_p3 }
  0x1c   : > { %897 = shalt.err (!%p894_p7)
}
  0x1d   : > { %s898_s7 = scalar_lea.vmem %s1088_s22, 2048  ;;  %p906_p2 = scmp.lt.s32.totalorder %s1088_s22, %s1088_s22 }
  0x1e   : > { %p899_p9 = scmp.ne.s32.totalorder %s1088_s22, %s898_s7  ;;  %p907_p6 = scmp.lt.s32.totalorder %s898_s7, %s898_s7 }
  0x20   : > { %p901_p10 = pnand %p899_p9, %p887_p13  ;;  %p908_p4 = por %p907_p6, %p906_p2 }
  0x22   : > { %p902_p1 = pneg %p901_p10 }
  0x24   : > { %p909_p8 = pnand %p908_p4, %p902_p1 }
  0x26   : > { %912 = shalt.err (!%p909_p8)
}
  0x27   : > { %s1016_s8 = smov 64   ;;  %s1017_s9 = smov 4  }
  0x28   : > { %793 = dma.hbm_to_vmem [thread:$0]  (!%p1095_p11), %s1308_s1, 2048, %s1088_s22, [#allocation6], %s1016_s8, %s1016_s8, %s1017_s9  }
  0x29   : > { %p25_p2 = scmp.eq.s32.totalorder %s24_s26, 0  ;;  %p34_p1 = scmp.ne.s32.totalorder %s1009_s14, %s1005_s13 }
  0x2a   : > { %p35_p4 = scmp.eq.s32.totalorder %s1013_s15, 0  ;;  %p803_p6 = scmp.lt.s32.totalorder %s1013_s15, 2 }
  0x2b   : > { %s1131_s17 = scalar_select %p25_p2, %s1009_s14, %s27_s25  }
  0x2c   : > { %p36_p8 = por %p35_p4, %p34_p1  ;;  %p1318_p10 = scmp.eq.s32.totalorder %s1065_s16, 1 }
  0x2d   : > { %s148_s27 = sand.u32 1, %s1009_s14   ;;  %s700_s28 = sshll.u32 %s1013_s15, 11 }
  0x2e   : > { %p1135_p12 = por %p1318_p10, %p34_p1  ;;  %s653_s29 = sshll.u32 %s148_s27, 7 }
  0x2f   : > { %s1144_s4 = scalar_lea.hbm %s1307_s0, %s700_s28  ;;  %s152_s22 = scalar_lea.vmem [#allocation2], %s653_s29 }
  0x30   : > { %s160_s25 = sshll.u32 %s152_s22, 4  ;;  %p1146_p11 = pnand %p803_p6, %p36_p8  ;;  %s1150_s25 = int_to_ptr.vmem [resolvable:$true] %s160_s25 }
  0x31   : > { %s1152_s5 = scalar_lea.sflag [#allocation3], %s148_s27  ;;  %s913_s6 = scalar_lea.hbm %s1144_s4, 2048 }
  0x32   : > { %p914_p13 = scmp.ne.s32.totalorder %s1144_s4, %s913_s6  ;;  %p915_p0 = pneg %p1146_p11 }
  0x33   : > { %s918_s9 = scalar_lea.hbm %s1307_s0, 4096  ;;  %p919_p7 = scmp.lt.u32.totalorder %s1144_s4, %s1307_s0 }
  0x34   : > { %p916_p3 = pnand %p915_p0, %p914_p13  ;;  %p920_p9 = scmp.lt.u32.totalorder %s918_s9, %s913_s6 }
  0x35   : > { %p922_p1 = scmp.lt.u32.totalorder %s913_s6, %s1144_s4 }
  0x36   : > { %p917_p5 = pneg %p916_p3  ;;  %p921_p2 = por %p920_p9, %p919_p7 }
  0x38   : > { %p923_p4 = por %p922_p1, %p921_p2 }
  0x3a   : > { %p924_p6 = pnand %p923_p4, %p917_p5 }
  0x3c   : > { %927 = shalt.err (!%p924_p6)
}
  0x3d   : > { %s928_s27 = scalar_lea.vmem %s1150_s25, 2048  ;;  %s1018_s28 = smov [#allocation2]  }
  0x3e   : > { %p929_p8 = scmp.ne.s32.totalorder %s1150_s25, %s928_s27  ;;  %s933_s29 = sshll.u32 %s1018_s28, 4  ;;  %s934_s29 = int_to_ptr.vmem [resolvable:$false] %s933_s29 }
  0x3f   : > { %s935_s23 = scalar_lea.vmem %s934_s29, 4096  ;;  %p936_p3 = scmp.lt.s32.totalorder %s1150_s25, %s934_s29 }
  0x40   : > { %p931_p10 = pnand %p929_p8, %p915_p0  ;;  %p937_p7 = scmp.lt.s32.totalorder %s935_s23, %s928_s27 }
  0x42   : > { %p932_p13 = pneg %p931_p10  ;;  %p938_p9 = por %p937_p7, %p936_p3 }
  0x44   : > { %p939_p2 = pnand %p938_p9, %p932_p13 }
  0x46   : > { %942 = shalt.err (!%p939_p2)
}
  0x47   : > { %s1019_s30 = smov 128   ;;  %s1020_s22 = smov 8  }
  0x48   : > { %797 = dma.hbm_to_vmem [thread:$0]  (!%p1146_p11), %s1144_s4, 2048, %s1150_s25, %s1152_s5, %s1019_s30, %s1019_s30, %s1020_s22  }
  0x49   : > { %p1321_p0 = scmp.ne.s32.totalorder %s1316_s20, 0 }
  0x4a   : > { %s1183_s6 = sand.u32 (!%p1321_p0), 1, %s1005_s13   ;;  %p1322_p5 = scmp.ne.s32.totalorder (!%p1321_p0), %s1314_s18, 0 }
  0x4b   : > { %172 = sbr.rel (%p1321_p0) target bundleno = 377 (0x179), region = 32  ;;  %s658_s7 = sshll.u32 (!%p1321_p0), %s1183_s6, 7 }
  0x4c   : > { %s175_s8 = scalar_lea.sflag (!%p1321_p0), [#allocation3], %s1183_s6  ;;  %s1189_s9 = scalar_lea.vmem (!%p1321_p0), [#allocation2], %s658_s7 }
  0x52   : > { %988 = dma.done.wait (%p1322_p5), %s175_s8, 2048  }
  0x53   : > { %990 = vsyncadd (%p1322_p5), %s175_s8, 4294965248  ;;  %p1323_p11 = scmp.eq.s32.totalorder %s1065_s16, 0 }
  0x55   : > { %992 = dma.done.wait (%p1323_p11), [#allocation6], 2048   ;;  %p1324_p1 = pmov %p1323_p11 }
  0x56   : > { %v845_v0 = vld [vmem:[#allocation5 + $0x40] sm:$0xff]   ;;  %v847_v2 = vld [vmem:[#allocation5 + $0x48] sm:$0xff]   ;;  %v849_v4 = vld [vmem:[#allocation5 + $0x50] sm:$0xff]   ;;  %s1224_s4 = scalar_lea.vmem [#allocation7], %s658_s7  ;;  %s701_s25 = sshll.u32 %s1065_s16, 11 }
  0x57   : > { %994 = vsyncadd (%p1324_p1), [#allocation6], 4294965248  ;;  %v846_v1 = vld [vmem:[#allocation5] sm:$0xff]   ;;  %702 = vmatprep.subr.bf16.mxu0 %v845_v0  ;;  %766 = vmatprep.subr.bf16.mxu1 %v845_v0  ;;  %v848_v3 = vld [vmem:[#allocation5 + $0x8] sm:$0xff]   ;;  %s566_s26 = sshll.u32 %s1224_s4, 4  ;;  %s1255_s11 = scalar_lea.hbm %s1310_s3, %s701_s25  ;;  %s1257_s26 = int_to_ptr.vmem [resolvable:$true] %s566_s26 }
  0x58   : > { %703 = vmatpush3.bf16.msra.mxu0 %v846_v1  ;;  %774 = vmatpush3.bf16.msra.mxu1 %v846_v1  ;;  %v850_v5 = vld [vmem:[#allocation5 + $0x10] sm:$0xff]   ;;  %v851_v6 = vld [vmem:[#allocation5 + $0x58] sm:$0xff]   ;;  %v853_v8 = vld [vmem:[#allocation5 + $0x60] sm:$0xff]   ;;  %s553_s16 = scalar_lea.sflag [#allocation4], %s1183_s6  ;;  %s943_s27 = scalar_lea.vmem %s1257_s26, 2048 }
  0x59   : > { %704 = vmatprep.subr.bf16.mxu0 %v847_v2  ;;  %767 = vmatprep.subr.bf16.mxu1 %v847_v2  ;;  %v852_v7 = vld [vmem:[#allocation5 + $0x18] sm:$0xff]   ;;  %v854_v9 = vld [vmem:[#allocation5 + $0x20] sm:$0xff]   ;;  %v855_v10 = vld [vmem:[#allocation5 + $0x68] sm:$0xff]   ;;  %p944_p4 = scmp.ne.s32.totalorder %s1257_s26, %s943_s27  ;;  %s1021_s28 = smov [#allocation7]  }
  0x5a   : > { %v863_v11 = vld [vmem:[%s1189_s9 + $0x4] ss:$8 sps:$4 sm:$0xff]   ;;  %v857_v14 = vld [vmem:[#allocation5 + $0x70] sm:$0xff]   ;;  %v859_v16 = vld [vmem:[#allocation5 + $0x78] sm:$0xff]   ;;  %s947_s29 = sshll.u32 %s1021_s28, 4  ;;  %s948_s29 = int_to_ptr.vmem [resolvable:$false] %s947_s29 }
  0x5b   : > { %v866_v12 = vld [vmem:[%s1189_s9 + $0x44] ss:$8 sps:$4 sm:$0xff]   ;;  %471 = vmatprep.mubr.bf16.mxu0 %v863_v11  ;;  %v858_v15 = vld [vmem:[#allocation5 + $0x30] sm:$0xff]   ;;  %v860_v17 = vld [vmem:[#allocation5 + $0x38] sm:$0xff]   ;;  %p945_p6 = pnand %p944_p4, %p1135_p12  ;;  %s949_s23 = scalar_lea.vmem %s948_s29, 4096 }
  0x5c   : > { %705 = vmatpush3.bf16.msra.mxu0 %v848_v3  ;;  %775 = vmatpush3.bf16.msra.mxu1 %v848_v3  ;;  %v856_v13 = vld [vmem:[#allocation5 + $0x28] sm:$0xff]   ;;  %v867_v20 = vld [vmem:[%s1189_s9 + $0x14] ss:$8 sps:$4 sm:$0xff]   ;;  %v871_v22 = vld [vmem:[%s1189_s9 + $0x10] ss:$8 sps:$4 sm:$0xff]   ;;  %p950_p10 = scmp.lt.s32.totalorder %s1257_s26, %s948_s29  ;;  %p951_p13 = scmp.lt.s32.totalorder %s949_s23, %s943_s27 }
  0x5d   : > { %706 = vmatprep.subr.bf16.mxu0 %v849_v4  ;;  %768 = vmatprep.subr.bf16.mxu1 %v849_v4  ;;  %v861_v18 = vld [vmem:[%s1189_s9] ss:$8 sps:$4 sm:$0xff]   ;;  %v869_v21 = vld [vmem:[%s1189_s9 + $0x54] ss:$8 sps:$4 sm:$0xff]   ;;  %v872_v23 = vld [vmem:[%s1189_s9 + $0x50] ss:$8 sps:$4 sm:$0xff]   ;;  %p946_p8 = pneg %p945_p6 }
  0x5e   : > { %503 = vmatprep.mubr.bf16.mxu1 %v866_v12  ;;  %v864_v19 = vld [vmem:[%s1189_s9 + $0x40] ss:$8 sps:$4 sm:$0xff]   ;;  %v873_v24 = vld [vmem:[%s1189_s9 + $0x24] ss:$8 sps:$4 sm:$0xff]   ;;  %v879_v28 = vld [vmem:[%s1189_s9 + $0x34] ss:$8 sps:$4 sm:$0xff]   ;;  %p952_p3 = por %p951_p13, %p950_p10 }
  0x5f   : > { %v875_v25 = vld [vmem:[%s1189_s9 + $0x64] ss:$8 sps:$4 sm:$0xff]   ;;  %v877_v26 = vld [vmem:[%s1189_s9 + $0x20] ss:$8 sps:$4 sm:$0xff]   ;;  %v881_v29 = vld [vmem:[%s1189_s9 + $0x74] ss:$8 sps:$4 sm:$0xff]  }
  0x60   : > { %707 = vmatpush3.bf16.msra.mxu0 %v850_v5  ;;  %776 = vmatpush3.bf16.msra.mxu1 %v850_v5  ;;  %v878_v27 = vld [vmem:[%s1189_s9 + $0x60] ss:$8 sps:$4 sm:$0xff]   ;;  %v883_v30 = vld [vmem:[%s1189_s9 + $0x30] ss:$8 sps:$4 sm:$0xff]   ;;  %p953_p7 = pnand %p952_p3, %p946_p8 }
  0x61   : > { %708 = vmatprep.subr.bf16.mxu0 %v851_v6  ;;  %769 = vmatprep.subr.bf16.mxu1 %v851_v6  ;;  %v884_v31 = vld [vmem:[%s1189_s9 + $0x70] ss:$8 sps:$4 sm:$0xff]   ;;  %v1218_v34 = vld [vmem:[%s1309_s2] ss:$0 sm:$0xff] }
  0x64   : > { %709 = vmatpush3.bf16.msra.mxu0 %v852_v7  ;;  %777 = vmatpush3.bf16.msra.mxu1 %v852_v7 }
  0x65   : > { %710 = vmatprep.subr.bf16.mxu0 %v853_v8  ;;  %770 = vmatprep.subr.bf16.mxu1 %v853_v8 }
  0x68   : > { %711 = vmatpush3.bf16.msra.mxu0 %v854_v9  ;;  %778 = vmatpush3.bf16.msra.mxu1 %v854_v9 }
  0x69   : > { %712 = vmatprep.subr.bf16.mxu0 %v855_v10  ;;  %771 = vmatprep.subr.bf16.mxu1 %v855_v10 }
  0x6c   : > { %713 = vmatpush3.bf16.msra.mxu0 %v856_v13  ;;  %779 = vmatpush3.bf16.msra.mxu1 %v856_v13 }
  0x6d   : > { %714 = vmatprep.subr.bf16.mxu0 %v857_v14  ;;  %772 = vmatprep.subr.bf16.mxu1 %v857_v14 }
  0x70   : > { %715 = vmatpush3.bf16.msra.mxu0 %v858_v15  ;;  %780 = vmatpush3.bf16.msra.mxu1 %v858_v15 }
  0x71   : > { %716 = vmatprep.subr.bf16.mxu0 %v859_v16  ;;  %773 = vmatprep.subr.bf16.mxu1 %v859_v16 }
  0x74   : > { %717 = vmatpush3.bf16.msra.mxu0 %v860_v17  ;;  %781 = vmatpush3.bf16.msra.mxu1 %v860_v17 }
  0x77   : > { %472 = vmatmul.mubr.bf16.vlgmr.msra.gmra.mrb[0].mxu0 %v861_v18  ;;  %504 = vmatmul.mubr.bf16.vlgmr.msra.gmra.mrb[0].mxu1 %v864_v19 }
  0x78   : > { %479 = vmatprep.mubr.bf16.mxu0 %v867_v20  ;;  %511 = vmatprep.mubr.bf16.mxu1 %v869_v21 }
  0x7f   : > { %480 = vmatmul.mubr.bf16.gmra.mrb[4].mxu0 %v871_v22  ;;  %512 = vmatmul.mubr.bf16.gmra.mrb[4].mxu1 %v872_v23 }
  0x80   : > { %487 = vmatprep.mubr.bf16.mxu0 %v873_v24  ;;  %519 = vmatprep.mubr.bf16.mxu1 %v875_v25 }
  0x87   : > { %488 = vmatmul.mubr.bf16.gmra.mrb[8].mxu0 %v877_v26  ;;  %520 = vmatmul.mubr.bf16.gmra.mrb[8].mxu1 %v878_v27 }
  0x88   : > { %495 = vmatprep.mubr.bf16.mxu0 %v879_v28  ;;  %527 = vmatprep.mubr.bf16.mxu1 %v881_v29 }
  0x8f   : > { %496 = vmatmul.mubr.bf16.gmra.mrb[12].mxu0 %v883_v30  ;;  %528 = vmatmul.mubr.bf16.gmra.mrb[12].mxu1 %v884_v31 }
 0x14a   : > { %v718_v32 = vpop.f32.mrb[0].mxu0  ;;  %v742_v33 = vpop.f32.mrb[0].mxu1 }
 0x14b   : > { %v719_v35 = vpop.f32.mrb[1].mxu0  ;;  %v743_v36 = vpop.f32.mrb[1].mxu1 }
 0x14c   : > { %v720_v37 = vadd.f32 %v719_v35, %v718_v32  ;;  %v744_v38 = vadd.f32 %v743_v36, %v742_v33  ;;  %v721_v39 = vpop.f32.mrb[2].mxu0  ;;  %v745_v40 = vpop.f32.mrb[2].mxu1 }
 0x14d   : > { %v722_v41 = vpop.f32.mrb[3].mxu0  ;;  %v746_v42 = vpop.f32.mrb[3].mxu1 }
 0x14e   : > { %v474_v43 = vadd.f32 %v720_v37, %v1218_v34  ;;  %v506_v44 = vadd.f32 %v744_v38, %v1218_v34  ;;  %v723_v45 = vadd.f32 %v722_v41, %v721_v39  ;;  %v747_v46 = vadd.f32 %v746_v42, %v745_v40 }
 0x150   : > { %536 = vst [vmem:[%s1224_s4] sm:$0xff] %v474_v43  ;;  %544 = vst [vmem:[%s1224_s4 + $0x40] sm:$0xff] %v506_v44  ;;  %v477_v47 = vadd.f32 %v723_v45, %v1218_v34  ;;  %v509_v48 = vadd.f32 %v747_v46, %v1218_v34 }
 0x152   : > { %537 = vst [vmem:[%s1224_s4 + $0x8] sm:$0xff] %v477_v47  ;;  %545 = vst [vmem:[%s1224_s4 + $0x48] sm:$0xff] %v509_v48  ;;  %v724_v49 = vpop.f32.mrb[4].mxu0  ;;  %v748_v50 = vpop.f32.mrb[4].mxu1 }
 0x153   : > { %v725_v51 = vpop.f32.mrb[5].mxu0  ;;  %v749_v52 = vpop.f32.mrb[5].mxu1 }
 0x154   : > { %v726_v53 = vadd.f32 %v725_v51, %v724_v49  ;;  %v750_v54 = vadd.f32 %v749_v52, %v748_v50  ;;  %v727_v55 = vpop.f32.mrb[6].mxu0  ;;  %v751_v56 = vpop.f32.mrb[6].mxu1 }
 0x155   : > { %v728_v57 = vpop.f32.mrb[7].mxu0  ;;  %v752_v58 = vpop.f32.mrb[7].mxu1 }
 0x156   : > { %v482_v59 = vadd.f32 %v726_v53, %v1218_v34  ;;  %v514_v60 = vadd.f32 %v750_v54, %v1218_v34  ;;  %v729_v61 = vadd.f32 %v728_v57, %v727_v55  ;;  %v753_v62 = vadd.f32 %v752_v58, %v751_v56 }
 0x158   : > { %538 = vst [vmem:[%s1224_s4 + $0x10] sm:$0xff] %v482_v59  ;;  %546 = vst [vmem:[%s1224_s4 + $0x50] sm:$0xff] %v514_v60  ;;  %v485_v63 = vadd.f32 %v729_v61, %v1218_v34  ;;  %v517_v0 = vadd.f32 %v753_v62, %v1218_v34 }
 0x15a   : > { %539 = vst [vmem:[%s1224_s4 + $0x18] sm:$0xff] %v485_v63  ;;  %547 = vst [vmem:[%s1224_s4 + $0x58] sm:$0xff] %v517_v0  ;;  %v730_v1 = vpop.f32.mrb[8].mxu0  ;;  %v754_v2 = vpop.f32.mrb[8].mxu1 }
 0x15b   : > { %v731_v3 = vpop.f32.mrb[9].mxu0  ;;  %v755_v4 = vpop.f32.mrb[9].mxu1 }
 0x15c   : > { %v732_v5 = vadd.f32 %v731_v3, %v730_v1  ;;  %v756_v6 = vadd.f32 %v755_v4, %v754_v2  ;;  %v733_v7 = vpop.f32.mrb[10].mxu0  ;;  %v757_v8 = vpop.f32.mrb[10].mxu1 }
 0x15d   : > { %v734_v9 = vpop.f32.mrb[11].mxu0  ;;  %v758_v10 = vpop.f32.mrb[11].mxu1 }
 0x15e   : > { %v490_v11 = vadd.f32 %v732_v5, %v1218_v34  ;;  %v522_v12 = vadd.f32 %v756_v6, %v1218_v34  ;;  %v735_v13 = vadd.f32 %v734_v9, %v733_v7  ;;  %v759_v14 = vadd.f32 %v758_v10, %v757_v8 }
 0x160   : > { %540 = vst [vmem:[%s1224_s4 + $0x20] sm:$0xff] %v490_v11  ;;  %548 = vst [vmem:[%s1224_s4 + $0x60] sm:$0xff] %v522_v12  ;;  %v493_v15 = vadd.f32 %v735_v13, %v1218_v34  ;;  %v525_v16 = vadd.f32 %v759_v14, %v1218_v34 }
 0x162   : > { %541 = vst [vmem:[%s1224_s4 + $0x28] sm:$0xff] %v493_v15  ;;  %549 = vst [vmem:[%s1224_s4 + $0x68] sm:$0xff] %v525_v16  ;;  %v736_v17 = vpop.f32.mrb[12].mxu0  ;;  %v760_v18 = vpop.f32.mrb[12].mxu1 }
 0x163   : > { %v737_v19 = vpop.f32.mrb[13].mxu0  ;;  %v761_v20 = vpop.f32.mrb[13].mxu1 }
 0x164   : > { %v738_v21 = vadd.f32 %v737_v19, %v736_v17  ;;  %v762_v22 = vadd.f32 %v761_v20, %v760_v18  ;;  %v739_v23 = vpop.f32.mrb[14].mxu0  ;;  %v763_v24 = vpop.f32.mrb[14].mxu1 }
 0x165   : > { %v740_v25 = vpop.f32.mrb[15].mxu0  ;;  %v764_v26 = vpop.f32.mrb[15].mxu1 }
 0x166   : > { %v498_v27 = vadd.f32 %v738_v21, %v1218_v34  ;;  %v530_v28 = vadd.f32 %v762_v22, %v1218_v34  ;;  %v741_v29 = vadd.f32 %v740_v25, %v739_v23  ;;  %v765_v30 = vadd.f32 %v764_v26, %v763_v24 }
 0x168   : > { %542 = vst [vmem:[%s1224_s4 + $0x30] sm:$0xff] %v498_v27  ;;  %550 = vst [vmem:[%s1224_s4 + $0x70] sm:$0xff] %v530_v28  ;;  %v501_v31 = vadd.f32 %v741_v29, %v1218_v34  ;;  %v533_v32 = vadd.f32 %v765_v30, %v1218_v34 }
 0x16a   : > { %543 = vst [vmem:[%s1224_s4 + $0x38] sm:$0xff] %v501_v31  ;;  %551 = vst [vmem:[%s1224_s4 + $0x78] sm:$0xff] %v533_v32 }
 0x16b   : > { %956 = shalt.err (!%p953_p7)
}
 0x16c   : > { %s957_s30 = scalar_lea.hbm %s1255_s11, 2048  ;;  %s961_s8 = scalar_lea.hbm %s1310_s3, 4096 }
 0x16d   : > { %p958_p9 = scmp.ne.s32.totalorder %s1255_s11, %s957_s30  ;;  %p962_p5 = scmp.lt.u32.totalorder %s1255_s11, %s1310_s3 }
 0x16e   : > { %p963_p11 = scmp.lt.u32.totalorder %s961_s8, %s957_s30  ;;  %p965_p4 = scmp.lt.u32.totalorder %s957_s30, %s1255_s11 }
 0x16f   : > { %p959_p2 = pnand %p958_p9, %p1135_p12 }
 0x170   : > { %p964_p1 = por %p963_p11, %p962_p5 }
 0x171   : > { %p960_p0 = pneg %p959_p2 }
 0x172   : > { %p966_p6 = por %p965_p4, %p964_p1 }
 0x174   : > { %p967_p8 = pnand %p966_p6, %p960_p0 }
 0x176   : > { %970 = shalt.err (!%p967_p8)
}
 0x177   : > { %s1022_s20 = smov 128   ;;  %s1023_s4 = smov 8  }
 0x178   : > { %788 = dma.vmem_to_hbm [thread:$0]  (%p1135_p12), %s1257_s26, 2048, %s1255_s11, %s553_s16, %s1022_s20, %s1022_s20, %s1023_s4  }
 0x179 PF: > { %s581_s25 = sand.u32 1, %s1001_s12   ;;  %p1325_p10 = scmp.ne.s32.totalorder %s1315_s19, 0 }
 0x17a   : > { %p1326_p13 = scmp.ge.s32.totalorder %s1013_s15, 2  ;;  %s582_s5 = scalar_lea.sflag [#allocation4], %s581_s25 }
 0x17c   : > { %p799_p3 = pnand %p1326_p13, %p1325_p10 }
 0x17e   : > { %996 = dma.done.wait (!%p799_p3), %s582_s5, 2048  }
 0x17f   : > { %998 = vsyncadd (!%p799_p3), %s582_s5, 4294965248  ;;  %p17_p7 = scmp.ge.s32.totalorder %s1100_s24, 4   ;;  %s1327_s12 = smov %s1005_s13 }
 0x180   : > { %s1328_s13 = smov %s1009_s14  ;;  %s1329_s14 = smov %s1131_s17 }
 0x181   : > { %s1330_s15 = smov %s1100_s24  ;;  %19 = sbr.rel (!%p17_p7) target bundleno = 6 (0x6), region = 81 }
 0x188   :  { %587 = vsyncpa [#allocation3], 1 }
 0x189   :  { %589 = vsyncpa [#allocation3 + $0x1], 1 }
 0x18a   :  { %590 = vsyncpa [#allocation6], 1 }
 0x18b   :  { %591 = vsyncpa [#allocation4], 1 }
 0x18c   :  { %593 = vsyncpa [#allocation4 + $0x1], 1 }

// kernel: tpu_custom_call.1
= control target key start
LH: loop header
LB: loop body
LE: loop exit
PB: predicated region body
PF: predicated region fallthrough
CT: control target
= control target key end

     0   :  { %8 = vsyncpa [#allocation3], 0  ;;  %s1307_s0 = inlined_call_operand.hbm [shape: bf16[256,256], index: 0, kind: input, shape index: {}]   ;;  %s1308_s1 = inlined_call_operand.hbm [shape: bf16[256,128], index: 1, kind: input, shape index: {}]   ;;  %s1309_s2 = inlined_call_operand.vmem [shape: f32[1,128], index: 2, kind: input, shape index: {}]   ;;  %s1310_s3 = inlined_call_operand.hbm [shape: f32[256,128], index: 3, kind: output, shape index: {}]  }
   0x1   :  { %10 = vsyncpa [#allocation3 + $0x1], 0 }
   0x2   :  { %11 = vsyncpa [#allocation6], 0 }
   0x3   :  { %12 = vsyncpa [#allocation4], 0 }
   0x4   :  { %14 = vsyncpa [#allocation4 + $0x1], 0  ;;  %s1044_s12 = smov 0   ;;  %s1046_s13 = smov 0  }
   0x5   :  { %s1048_s14 = smov 0   ;;  %s1050_s15 = smov 0  }
   0x6 LB: > { %s1065_s16 = sadd.s32 4294967295, %s1013_s15   ;;  %s649_s17 = sadd.s32 4294967294, %s1013_s15   ;;  %s1013_s15 = sphi %s1050_s15, %s1330_s15   ;;  %s1009_s14 = sphi %s1048_s14, %s1329_s14   ;;  %s1005_s13 = sphi %s1046_s13, %s1328_s13   ;;  %s1001_s12 = sphi %s1044_s12, %s1327_s12  }
   0x7   : > { %p40_p0 = scmp.ne.s32.totalorder %s1005_s13, %s1001_s12  ;;  %p1311_p1 = scmp.eq.s32.totalorder %s1065_s16, 0 }
   0x8   : > { %p112_p3 = scmp.eq.s32.totalorder %s649_s17, 1  ;;  %p650_p5 = scmp.ge.s32.totalorder %s1013_s15, 1 }
   0x9   : > { %p1074_p4 = por %p1311_p1, %p40_p0  ;;  %p119_p7 = scmp.lt.s32.totalorder %s1013_s15, 3 }
   0xa   : > { %p1079_p6 = por %p112_p3, %p40_p0  ;;  %s1015_s21 = smov [#allocation5]  }
   0xb   : > { %s1314_s18 = scalar_select %p1074_p4, 1, 0 }
   0xc   : > { %s1315_s19 = scalar_select %p1079_p6, 1, 0 }
   0xd   : > { %p1084_p8 = pnand %p650_p5, %p119_p7  ;;  %s131_s22 = sshll.u32 %s1015_s21, 4  ;;  %s1088_s22 = int_to_ptr.vmem [resolvable:$true] %s131_s22 }
   0xe   : > { %s1100_s24 = sadd.s32 1, %s1013_s15   ;;  %s27_s25 = sadd.s32 1, %s1009_s14 }
   0xf   : > { %s1316_s20 = scalar_select %p1084_p8, 1, 0 }
  0x10   : > { %p790_p9 = pneg %p1084_p8  ;;  %s24_s26 = ssub.s32 %s1013_s15, %s1100_s24 }
  0x11   : > { %s885_s29 = scalar_lea.hbm %s1308_s1, 2048 }
  0x12   : > { %p1095_p11 = pnand %p790_p9, %p1311_p1  ;;  %p886_p12 = scmp.ne.s32.totalorder %s1308_s1, %s885_s29 }
  0x13   : > { %p892_p5 = scmp.lt.u32.totalorder %s885_s29, %s1308_s1 }
  0x14   : > { %p887_p13 = pneg %p1095_p11 }
  0x16   : > { %p888_p0 = pnand %p887_p13, %p886_p12 }
  0x18   : > { %p889_p3 = pneg %p888_p0 }
  0x1a   : > { %p894_p7 = pnand %p892_p5, %p889_p3 }
  0x1c   : > { %897 = shalt.err (!%p894_p7)
}
  0x1d   : > { %s898_s7 = scalar_lea.vmem %s1088_s22, 2048  ;;  %p906_p2 = scmp.lt.s32.totalorder %s1088_s22, %s1088_s22 }
  0x1e   : > { %p899_p9 = scmp.ne.s32.totalorder %s1088_s22, %s898_s7  ;;  %p907_p6 = scmp.lt.s32.totalorder %s898_s7, %s898_s7 }
  0x20   : > { %p901_p10 = pnand %p899_p9, %p887_p13  ;;  %p908_p4 = por %p907_p6, %p906_p2 }
  0x22   : > { %p902_p1 = pneg %p901_p10 }
  0x24   : > { %p909_p8 = pnand %p908_p4, %p902_p1 }
  0x26   : > { %912 = shalt.err (!%p909_p8)
}
  0x27   : > { %s1016_s8 = smov 64   ;;  %s1017_s9 = smov 4  }
  0x28   : > { %793 = dma.hbm_to_vmem [thread:$0]  (!%p1095_p11), %s1308_s1, 2048, %s1088_s22, [#allocation6], %s1016_s8, %s1016_s8, %s1017_s9  }
  0x29   : > { %p25_p2 = scmp.eq.s32.totalorder %s24_s26, 0  ;;  %p34_p1 = scmp.ne.s32.totalorder %s1009_s14, %s1005_s13 }
  0x2a   : > { %p35_p4 = scmp.eq.s32.totalorder %s1013_s15, 0  ;;  %p803_p6 = scmp.lt.s32.totalorder %s1013_s15, 2 }
  0x2b   : > { %s1131_s17 = scalar_select %p25_p2, %s1009_s14, %s27_s25  }
  0x2c   : > { %p36_p8 = por %p35_p4, %p34_p1  ;;  %p1318_p10 = scmp.eq.s32.totalorder %s1065_s16, 1 }
  0x2d   : > { %s148_s27 = sand.u32 1, %s1009_s14   ;;  %s700_s28 = sshll.u32 %s1013_s15, 11 }
  0x2e   : > { %p1135_p12 = por %p1318_p10, %p34_p1  ;;  %s653_s29 = sshll.u32 %s148_s27, 7 }
  0x2f   : > { %s1144_s4 = scalar_lea.hbm %s1307_s0, %s700_s28  ;;  %s152_s22 = scalar_lea.vmem [#allocation2], %s653_s29 }
  0x30   : > { %s160_s25 = sshll.u32 %s152_s22, 4  ;;  %p1146_p11 = pnand %p803_p6, %p36_p8  ;;  %s1150_s25 = int_to_ptr.vmem [resolvable:$true] %s160_s25 }
  0x31   : > { %s1152_s5 = scalar_lea.sflag [#allocation3], %s148_s27  ;;  %s913_s6 = scalar_lea.hbm %s1144_s4, 2048 }
  0x32   : > { %p914_p13 = scmp.ne.s32.totalorder %s1144_s4, %s913_s6  ;;  %p915_p0 = pneg %p1146_p11 }
  0x33   : > { %s918_s9 = scalar_lea.hbm %s1307_s0, 4096  ;;  %p919_p7 = scmp.lt.u32.totalorder %s1144_s4, %s1307_s0 }
  0x34   : > { %p916_p3 = pnand %p915_p0, %p914_p13  ;;  %p920_p9 = scmp.lt.u32.totalorder %s918_s9, %s913_s6 }
  0x35   : > { %p922_p1 = scmp.lt.u32.totalorder %s913_s6, %s1144_s4 }
  0x36   : > { %p917_p5 = pneg %p916_p3  ;;  %p921_p2 = por %p920_p9, %p919_p7 }
  0x38   : > { %p923_p4 = por %p922_p1, %p921_p2 }
  0x3a   : > { %p924_p6 = pnand %p923_p4, %p917_p5 }
  0x3c   : > { %927 = shalt.err (!%p924_p6)
}
  0x3d   : > { %s928_s27 = scalar_lea.vmem %s1150_s25, 2048  ;;  %s1018_s28 = smov [#allocation2]  }
  0x3e   : > { %p929_p8 = scmp.ne.s32.totalorder %s1150_s25, %s928_s27  ;;  %s933_s29 = sshll.u32 %s1018_s28, 4  ;;  %s934_s29 = int_to_ptr.vmem [resolvable:$false] %s933_s29 }
  0x3f   : > { %s935_s23 = scalar_lea.vmem %s934_s29, 4096  ;;  %p936_p3 = scmp.lt.s32.totalorder %s1150_s25, %s934_s29 }
  0x40   : > { %p931_p10 = pnand %p929_p8, %p915_p0  ;;  %p937_p7 = scmp.lt.s32.totalorder %s935_s23, %s928_s27 }
  0x42   : > { %p932_p13 = pneg %p931_p10  ;;  %p938_p9 = por %p937_p7, %p936_p3 }
  0x44   : > { %p939_p2 = pnand %p938_p9, %p932_p13 }
  0x46   : > { %942 = shalt.err (!%p939_p2)
}
  0x47   : > { %s1019_s30 = smov 128   ;;  %s1020_s22 = smov 8  }
  0x48   : > { %797 = dma.hbm_to_vmem [thread:$0]  (!%p1146_p11), %s1144_s4, 2048, %s1150_s25, %s1152_s5, %s1019_s30, %s1019_s30, %s1020_s22  }
  0x49   : > { %p1321_p0 = scmp.ne.s32.totalorder %s1316_s20, 0 }
  0x4a   : > { %s1183_s6 = sand.u32 (!%p1321_p0), 1, %s1005_s13   ;;  %p1322_p5 = scmp.ne.s32.totalorder (!%p1321_p0), %s1314_s18, 0 }
  0x4b   : > { %172 = sbr.rel (%p1321_p0) target bundleno = 377 (0x179), region = 32  ;;  %s658_s7 = sshll.u32 (!%p1321_p0), %s1183_s6, 7 }
  0x4c   : > { %s175_s8 = scalar_lea.sflag (!%p1321_p0), [#allocation3], %s1183_s6  ;;  %s1189_s9 = scalar_lea.vmem (!%p1321_p0), [#allocation2], %s658_s7 }
  0x52   : > { %988 = dma.done.wait (%p1322_p5), %s175_s8, 2048  }
  0x53   : > { %990 = vsyncadd (%p1322_p5), %s175_s8, 4294965248  ;;  %p1323_p11 = scmp.eq.s32.totalorder %s1065_s16, 0 }
  0x55   : > { %992 = dma.done.wait (%p1323_p11), [#allocation6], 2048   ;;  %p1324_p1 = pmov %p1323_p11 }
  0x56   : > { %v845_v0 = vld [vmem:[#allocation5 + $0x40] sm:$0xff]   ;;  %v847_v2 = vld [vmem:[#allocation5 + $0x48] sm:$0xff]   ;;  %v849_v4 = vld [vmem:[#allocation5 + $0x50] sm:$0xff]   ;;  %s1224_s4 = scalar_lea.vmem [#allocation7], %s658_s7  ;;  %s701_s25 = sshll.u32 %s1065_s16, 11 }
  0x57   : > { %994 = vsyncadd (%p1324_p1), [#allocation6], 4294965248  ;;  %v846_v1 = vld [vmem:[#allocation5] sm:$0xff]   ;;  %702 = vmatprep.subr.bf16.mxu0 %v845_v0  ;;  %766 = vmatprep.subr.bf16.mxu1 %v845_v0  ;;  %v848_v3 = vld [vmem:[#allocation5 + $0x8] sm:$0xff]   ;;  %s566_s26 = sshll.u32 %s1224_s4, 4  ;;  %s1255_s11 = scalar_lea.hbm %s1310_s3, %s701_s25  ;;  %s1257_s26 = int_to_ptr.vmem [resolvable:$true] %s566_s26 }
  0x58   : > { %703 = vmatpush3.bf16.msra.mxu0 %v846_v1  ;;  %774 = vmatpush3.bf16.msra.mxu1 %v846_v1  ;;  %v850_v5 = vld [vmem:[#allocation5 + $0x10] sm:$0xff]   ;;  %v851_v6 = vld [vmem:[#allocation5 + $0x58] sm:$0xff]   ;;  %v853_v8 = vld [vmem:[#allocation5 + $0x60] sm:$0xff]   ;;  %s553_s16 = scalar_lea.sflag [#allocation4], %s1183_s6  ;;  %s943_s27 = scalar_lea.vmem %s1257_s26, 2048 }
  0x59   : > { %704 = vmatprep.subr.bf16.mxu0 %v847_v2  ;;  %767 = vmatprep.subr.bf16.mxu1 %v847_v2  ;;  %v852_v7 = vld [vmem:[#allocation5 + $0x18] sm:$0xff]   ;;  %v854_v9 = vld [vmem:[#allocation5 + $0x20] sm:$0xff]   ;;  %v855_v10 = vld [vmem:[#allocation5 + $0x68] sm:$0xff]   ;;  %p944_p4 = scmp.ne.s32.totalorder %s1257_s26, %s943_s27  ;;  %s1021_s28 = smov [#allocation7]  }
  0x5a   : > { %v863_v11 = vld [vmem:[%s1189_s9 + $0x4] ss:$8 sps:$4 sm:$0xff]   ;;  %v857_v14 = vld [vmem:[#allocation5 + $0x70] sm:$0xff]   ;;  %v859_v16 = vld [vmem:[#allocation5 + $0x78] sm:$0xff]   ;;  %s947_s29 = sshll.u32 %s1021_s28, 4  ;;  %s948_s29 = int_to_ptr.vmem [resolvable:$false] %s947_s29 }
  0x5b   : > { %v866_v12 = vld [vmem:[%s1189_s9 + $0x44] ss:$8 sps:$4 sm:$0xff]   ;;  %471 = vmatprep.mubr.bf16.mxu0 %v863_v11  ;;  %v858_v15 = vld [vmem:[#allocation5 + $0x30] sm:$0xff]   ;;  %v860_v17 = vld [vmem:[#allocation5 + $0x38] sm:$0xff]   ;;  %p945_p6 = pnand %p944_p4, %p1135_p12  ;;  %s949_s23 = scalar_lea.vmem %s948_s29, 4096 }
  0x5c   : > { %705 = vmatpush3.bf16.msra.mxu0 %v848_v3  ;;  %775 = vmatpush3.bf16.msra.mxu1 %v848_v3  ;;  %v856_v13 = vld [vmem:[#allocation5 + $0x28] sm:$0xff]   ;;  %v867_v20 = vld [vmem:[%s1189_s9 + $0x14] ss:$8 sps:$4 sm:$0xff]   ;;  %v871_v22 = vld [vmem:[%s1189_s9 + $0x10] ss:$8 sps:$4 sm:$0xff]   ;;  %p950_p10 = scmp.lt.s32.totalorder %s1257_s26, %s948_s29  ;;  %p951_p13 = scmp.lt.s32.totalorder %s949_s23, %s943_s27 }
  0x5d   : > { %706 = vmatprep.subr.bf16.mxu0 %v849_v4  ;;  %768 = vmatprep.subr.bf16.mxu1 %v849_v4  ;;  %v861_v18 = vld [vmem:[%s1189_s9] ss:$8 sps:$4 sm:$0xff]   ;;  %v869_v21 = vld [vmem:[%s1189_s9 + $0x54] ss:$8 sps:$4 sm:$0xff]   ;;  %v872_v23 = vld [vmem:[%s1189_s9 + $0x50] ss:$8 sps:$4 sm:$0xff]   ;;  %p946_p8 = pneg %p945_p6 }
  0x5e   : > { %503 = vmatprep.mubr.bf16.mxu1 %v866_v12  ;;  %v864_v19 = vld [vmem:[%s1189_s9 + $0x40] ss:$8 sps:$4 sm:$0xff]   ;;  %v873_v24 = vld [vmem:[%s1189_s9 + $0x24] ss:$8 sps:$4 sm:$0xff]   ;;  %v879_v28 = vld [vmem:[%s1189_s9 + $0x34] ss:$8 sps:$4 sm:$0xff]   ;;  %p952_p3 = por %p951_p13, %p950_p10 }
  0x5f   : > { %v875_v25 = vld [vmem:[%s1189_s9 + $0x64] ss:$8 sps:$4 sm:$0xff]   ;;  %v877_v26 = vld [vmem:[%s1189_s9 + $0x20] ss:$8 sps:$4 sm:$0xff]   ;;  %v881_v29 = vld [vmem:[%s1189_s9 + $0x74] ss:$8 sps:$4 sm:$0xff]  }
  0x60   : > { %707 = vmatpush3.bf16.msra.mxu0 %v850_v5  ;;  %776 = vmatpush3.bf16.msra.mxu1 %v850_v5  ;;  %v878_v27 = vld [vmem:[%s1189_s9 + $0x60] ss:$8 sps:$4 sm:$0xff]   ;;  %v883_v30 = vld [vmem:[%s1189_s9 + $0x30] ss:$8 sps:$4 sm:$0xff]   ;;  %p953_p7 = pnand %p952_p3, %p946_p8 }
  0x61   : > { %708 = vmatprep.subr.bf16.mxu0 %v851_v6  ;;  %769 = vmatprep.subr.bf16.mxu1 %v851_v6  ;;  %v884_v31 = vld [vmem:[%s1189_s9 + $0x70] ss:$8 sps:$4 sm:$0xff]   ;;  %v1218_v34 = vld [vmem:[%s1309_s2] ss:$0 sm:$0xff] }
  0x64   : > { %709 = vmatpush3.bf16.msra.mxu0 %v852_v7  ;;  %777 = vmatpush3.bf16.msra.mxu1 %v852_v7 }
  0x65   : > { %710 = vmatprep.subr.bf16.mxu0 %v853_v8  ;;  %770 = vmatprep.subr.bf16.mxu1 %v853_v8 }
  0x68   : > { %711 = vmatpush3.bf16.msra.mxu0 %v854_v9  ;;  %778 = vmatpush3.bf16.msra.mxu1 %v854_v9 }
  0x69   : > { %712 = vmatprep.subr.bf16.mxu0 %v855_v10  ;;  %771 = vmatprep.subr.bf16.mxu1 %v855_v10 }
  0x6c   : > { %713 = vmatpush3.bf16.msra.mxu0 %v856_v13  ;;  %779 = vmatpush3.bf16.msra.mxu1 %v856_v13 }
  0x6d   : > { %714 = vmatprep.subr.bf16.mxu0 %v857_v14  ;;  %772 = vmatprep.subr.bf16.mxu1 %v857_v14 }
  0x70   : > { %715 = vmatpush3.bf16.msra.mxu0 %v858_v15  ;;  %780 = vmatpush3.bf16.msra.mxu1 %v858_v15 }
  0x71   : > { %716 = vmatprep.subr.bf16.mxu0 %v859_v16  ;;  %773 = vmatprep.subr.bf16.mxu1 %v859_v16 }
  0x74   : > { %717 = vmatpush3.bf16.msra.mxu0 %v860_v17  ;;  %781 = vmatpush3.bf16.msra.mxu1 %v860_v17 }
  0x77   : > { %472 = vmatmul.mubr.bf16.vlgmr.msra.gmra.mrb[0].mxu0 %v861_v18  ;;  %504 = vmatmul.mubr.bf16.vlgmr.msra.gmra.mrb[0].mxu1 %v864_v19 }
  0x78   : > { %479 = vmatprep.mubr.bf16.mxu0 %v867_v20  ;;  %511 = vmatprep.mubr.bf16.mxu1 %v869_v21 }
  0x7f   : > { %480 = vmatmul.mubr.bf16.gmra.mrb[4].mxu0 %v871_v22  ;;  %512 = vmatmul.mubr.bf16.gmra.mrb[4].mxu1 %v872_v23 }
  0x80   : > { %487 = vmatprep.mubr.bf16.mxu0 %v873_v24  ;;  %519 = vmatprep.mubr.bf16.mxu1 %v875_v25 }
  0x87   : > { %488 = vmatmul.mubr.bf16.gmra.mrb[8].mxu0 %v877_v26  ;;  %520 = vmatmul.mubr.bf16.gmra.mrb[8].mxu1 %v878_v27 }
  0x88   : > { %495 = vmatprep.mubr.bf16.mxu0 %v879_v28  ;;  %527 = vmatprep.mubr.bf16.mxu1 %v881_v29 }
  0x8f   : > { %496 = vmatmul.mubr.bf16.gmra.mrb[12].mxu0 %v883_v30  ;;  %528 = vmatmul.mubr.bf16.gmra.mrb[12].mxu1 %v884_v31 }
 0x14a   : > { %v718_v32 = vpop.f32.mrb[0].mxu0  ;;  %v742_v33 = vpop.f32.mrb[0].mxu1 }
 0x14b   : > { %v719_v35 = vpop.f32.mrb[1].mxu0  ;;  %v743_v36 = vpop.f32.mrb[1].mxu1 }
 0x14c   : > { %v720_v37 = vadd.f32 %v719_v35, %v718_v32  ;;  %v744_v38 = vadd.f32 %v743_v36, %v742_v33  ;;  %v721_v39 = vpop.f32.mrb[2].mxu0  ;;  %v745_v40 = vpop.f32.mrb[2].mxu1 }
 0x14d   : > { %v722_v41 = vpop.f32.mrb[3].mxu0  ;;  %v746_v42 = vpop.f32.mrb[3].mxu1 }
 0x14e   : > { %v474_v43 = vadd.f32 %v720_v37, %v1218_v34  ;;  %v506_v44 = vadd.f32 %v744_v38, %v1218_v34  ;;  %v723_v45 = vadd.f32 %v722_v41, %v721_v39  ;;  %v747_v46 = vadd.f32 %v746_v42, %v745_v40 }
 0x150   : > { %536 = vst [vmem:[%s1224_s4] sm:$0xff] %v474_v43  ;;  %544 = vst [vmem:[%s1224_s4 + $0x40] sm:$0xff] %v506_v44  ;;  %v477_v47 = vadd.f32 %v723_v45, %v1218_v34  ;;  %v509_v48 = vadd.f32 %v747_v46, %v1218_v34 }
 0x152   : > { %537 = vst [vmem:[%s1224_s4 + $0x8] sm:$0xff] %v477_v47  ;;  %545 = vst [vmem:[%s1224_s4 + $0x48] sm:$0xff] %v509_v48  ;;  %v724_v49 = vpop.f32.mrb[4].mxu0  ;;  %v748_v50 = vpop.f32.mrb[4].mxu1 }
 0x153   : > { %v725_v51 = vpop.f32.mrb[5].mxu0  ;;  %v749_v52 = vpop.f32.mrb[5].mxu1 }
 0x154   : > { %v726_v53 = vadd.f32 %v725_v51, %v724_v49  ;;  %v750_v54 = vadd.f32 %v749_v52, %v748_v50  ;;  %v727_v55 = vpop.f32.mrb[6].mxu0  ;;  %v751_v56 = vpop.f32.mrb[6].mxu1 }
 0x155   : > { %v728_v57 = vpop.f32.mrb[7].mxu0  ;;  %v752_v58 = vpop.f32.mrb[7].mxu1 }
 0x156   : > { %v482_v59 = vadd.f32 %v726_v53, %v1218_v34  ;;  %v514_v60 = vadd.f32 %v750_v54, %v1218_v34  ;;  %v729_v61 = vadd.f32 %v728_v57, %v727_v55  ;;  %v753_v62 = vadd.f32 %v752_v58, %v751_v56 }
 0x158   : > { %538 = vst [vmem:[%s1224_s4 + $0x10] sm:$0xff] %v482_v59  ;;  %546 = vst [vmem:[%s1224_s4 + $0x50] sm:$0xff] %v514_v60  ;;  %v485_v63 = vadd.f32 %v729_v61, %v1218_v34  ;;  %v517_v0 = vadd.f32 %v753_v62, %v1218_v34 }
 0x15a   : > { %539 = vst [vmem:[%s1224_s4 + $0x18] sm:$0xff] %v485_v63  ;;  %547 = vst [vmem:[%s1224_s4 + $0x58] sm:$0xff] %v517_v0  ;;  %v730_v1 = vpop.f32.mrb[8].mxu0  ;;  %v754_v2 = vpop.f32.mrb[8].mxu1 }
 0x15b   : > { %v731_v3 = vpop.f32.mrb[9].mxu0  ;;  %v755_v4 = vpop.f32.mrb[9].mxu1 }
 0x15c   : > { %v732_v5 = vadd.f32 %v731_v3, %v730_v1  ;;  %v756_v6 = vadd.f32 %v755_v4, %v754_v2  ;;  %v733_v7 = vpop.f32.mrb[10].mxu0  ;;  %v757_v8 = vpop.f32.mrb[10].mxu1 }
 0x15d   : > { %v734_v9 = vpop.f32.mrb[11].mxu0  ;;  %v758_v10 = vpop.f32.mrb[11].mxu1 }
 0x15e   : > { %v490_v11 = vadd.f32 %v732_v5, %v1218_v34  ;;  %v522_v12 = vadd.f32 %v756_v6, %v1218_v34  ;;  %v735_v13 = vadd.f32 %v734_v9, %v733_v7  ;;  %v759_v14 = vadd.f32 %v758_v10, %v757_v8 }
 0x160   : > { %540 = vst [vmem:[%s1224_s4 + $0x20] sm:$0xff] %v490_v11  ;;  %548 = vst [vmem:[%s1224_s4 + $0x60] sm:$0xff] %v522_v12  ;;  %v493_v15 = vadd.f32 %v735_v13, %v1218_v34  ;;  %v525_v16 = vadd.f32 %v759_v14, %v1218_v34 }
 0x162   : > { %541 = vst [vmem:[%s1224_s4 + $0x28] sm:$0xff] %v493_v15  ;;  %549 = vst [vmem:[%s1224_s4 + $0x68] sm:$0xff] %v525_v16  ;;  %v736_v17 = vpop.f32.mrb[12].mxu0  ;;  %v760_v18 = vpop.f32.mrb[12].mxu1 }
 0x163   : > { %v737_v19 = vpop.f32.mrb[13].mxu0  ;;  %v761_v20 = vpop.f32.mrb[13].mxu1 }
 0x164   : > { %v738_v21 = vadd.f32 %v737_v19, %v736_v17  ;;  %v762_v22 = vadd.f32 %v761_v20, %v760_v18  ;;  %v739_v23 = vpop.f32.mrb[14].mxu0  ;;  %v763_v24 = vpop.f32.mrb[14].mxu1 }
 0x165   : > { %v740_v25 = vpop.f32.mrb[15].mxu0  ;;  %v764_v26 = vpop.f32.mrb[15].mxu1 }
 0x166   : > { %v498_v27 = vadd.f32 %v738_v21, %v1218_v34  ;;  %v530_v28 = vadd.f32 %v762_v22, %v1218_v34  ;;  %v741_v29 = vadd.f32 %v740_v25, %v739_v23  ;;  %v765_v30 = vadd.f32 %v764_v26, %v763_v24 }
 0x168   : > { %542 = vst [vmem:[%s1224_s4 + $0x30] sm:$0xff] %v498_v27  ;;  %550 = vst [vmem:[%s1224_s4 + $0x70] sm:$0xff] %v530_v28  ;;  %v501_v31 = vadd.f32 %v741_v29, %v1218_v34  ;;  %v533_v32 = vadd.f32 %v765_v30, %v1218_v34 }
 0x16a   : > { %543 = vst [vmem:[%s1224_s4 + $0x38] sm:$0xff] %v501_v31  ;;  %551 = vst [vmem:[%s1224_s4 + $0x78] sm:$0xff] %v533_v32 }
 0x16b   : > { %956 = shalt.err (!%p953_p7)
}
 0x16c   : > { %s957_s30 = scalar_lea.hbm %s1255_s11, 2048  ;;  %s961_s8 = scalar_lea.hbm %s1310_s3, 4096 }
 0x16d   : > { %p958_p9 = scmp.ne.s32.totalorder %s1255_s11, %s957_s30  ;;  %p962_p5 = scmp.lt.u32.totalorder %s1255_s11, %s1310_s3 }
 0x16e   : > { %p963_p11 = scmp.lt.u32.totalorder %s961_s8, %s957_s30  ;;  %p965_p4 = scmp.lt.u32.totalorder %s957_s30, %s1255_s11 }
 0x16f   : > { %p959_p2 = pnand %p958_p9, %p1135_p12 }
 0x170   : > { %p964_p1 = por %p963_p11, %p962_p5 }
 0x171   : > { %p960_p0 = pneg %p959_p2 }
 0x172   : > { %p966_p6 = por %p965_p4, %p964_p1 }
 0x174   : > { %p967_p8 = pnand %p966_p6, %p960_p0 }
 0x176   : > { %970 = shalt.err (!%p967_p8)
}
 0x177   : > { %s1022_s20 = smov 128   ;;  %s1023_s4 = smov 8  }
 0x178   : > { %788 = dma.vmem_to_hbm [thread:$0]  (%p1135_p12), %s1257_s26, 2048, %s1255_s11, %s553_s16, %s1022_s20, %s1022_s20, %s1023_s4  }
 0x179 PF: > { %s581_s25 = sand.u32 1, %s1001_s12   ;;  %p1325_p10 = scmp.ne.s32.totalorder %s1315_s19, 0 }
 0x17a   : > { %p1326_p13 = scmp.ge.s32.totalorder %s1013_s15, 2  ;;  %s582_s5 = scalar_lea.sflag [#allocation4], %s581_s25 }
 0x17c   : > { %p799_p3 = pnand %p1326_p13, %p1325_p10 }
 0x17e   : > { %996 = dma.done.wait (!%p799_p3), %s582_s5, 2048  }
 0x17f   : > { %998 = vsyncadd (!%p799_p3), %s582_s5, 4294965248  ;;  %p17_p7 = scmp.ge.s32.totalorder %s1100_s24, 4   ;;  %s1327_s12 = smov %s1005_s13 }
 0x180   : > { %s1328_s13 = smov %s1009_s14  ;;  %s1329_s14 = smov %s1131_s17 }
 0x181   : > { %s1330_s15 = smov %s1100_s24  ;;  %19 = sbr.rel (!%p17_p7) target bundleno = 6 (0x6), region = 81 }
 0x188   :  { %587 = vsyncpa [#allocation3], 1 }
 0x189   :  { %589 = vsyncpa [#allocation3 + $0x1], 1 }
 0x18a   :  { %590 = vsyncpa [#allocation6], 1 }
 0x18b   :  { %591 = vsyncpa [#allocation4], 1 }
 0x18c   :  { %593 = vsyncpa [#allocation4 + $0x1], 1 }

</bundles_post_ra>
